<compile_context>
chip_gen: v7x
topology: tpu7x:2x2x1
jax: 0.10.0
libtpu: 0.0.40
codegen_flags: <defaults>
</compile_context>

<pallas_src>
import functools

import jax
import jax.numpy as jnp
from jax import lax
from jax.experimental import pallas as pl
from jax.experimental.pallas import tpu as pltpu

MARGIN = 0.2
EPS = 1e-6  # F.pairwise_distance default eps (added to the difference)

# NT matmul dimension numbers: contract last dims of both operands -> (M, N).
_NT_DIMS = (((1,), (1,)), ((), ()))


def _triplet_loss_kernel(a_row_ref, pos_ref, a_col_ref, hinge_ref, min_sq_ref,
                         *, margin, eps):
    i_t = pl.program_id(0)            # anchor (row) tile      -- "parallel"
    k_t = pl.program_id(1)            # negative (column) tile -- "arbitrary" (reduction)
    nk = pl.num_programs(1)

    a_row = a_row_ref[...]            # (TM, D) f32
    a_col = a_col_ref[...]            # (TK, D) f32
    tm, d = a_row.shape
    tk = a_col.shape[0]
    eps = jnp.float32(eps)

    @pl.when(k_t == 0)
    def _init():
        min_sq_ref[...] = jnp.full(min_sq_ref.shape, jnp.inf, dtype=jnp.float32)

    # Gram-matrix squared distances on the MXU.
    gram = lax.dot_general(a_row, a_col, _NT_DIMS,
                           preferred_element_type=jnp.float32,
                           precision=lax.Precision.HIGHEST)        # (TM, TK)
    sq_row = jnp.sum(a_row * a_row, axis=-1)[:, None]              # (TM, 1)
    s_row = jnp.sum(a_row, axis=-1)[:, None]                       # (TM, 1)
    sq_col = jnp.sum(a_col * a_col, axis=-1)[None, :]              # (1, TK)
    s_col = jnp.sum(a_col, axis=-1)[None, :]                       # (1, TK)

    sq = (sq_row + sq_col) - 2.0 * gram \
         + 2.0 * eps * (s_row - s_col) + jnp.float32(d) * eps * eps
    sq = jnp.maximum(sq, jnp.float32(0.0))   # guard f32 cancellation before sqrt/min

    # Only the diagonal tile needs the "k != i" exclusion (tiles are square: TM == TK).
    @pl.when(i_t == k_t)
    def _diag_tile():
        row = lax.broadcasted_iota(jnp.int32, (tm, tk), 0)
        col = lax.broadcasted_iota(jnp.int32, (tm, tk), 1)
        masked = jnp.where(row == col, jnp.float32(jnp.inf), sq)
        min_sq_ref[...] = jnp.minimum(min_sq_ref[...],
                                      jnp.min(masked, axis=-1)[:, None])

    @pl.when(i_t != k_t)
    def _off_diag_tile():
        min_sq_ref[...] = jnp.minimum(min_sq_ref[...],
                                      jnp.min(sq, axis=-1)[:, None])

    @pl.when(k_t == nk - 1)
    def _finalize():
        p = pos_ref[...]                                           # (TM, D)
        diff_ap = a_row - p + eps
        d_ap = jnp.sqrt(jnp.sum(diff_ap * diff_ap, axis=-1)[:, None])   # (TM, 1)
        d_an = jnp.sqrt(min_sq_ref[...])                                # (TM, 1)
        hinge_ref[...] = jnp.maximum(d_ap - d_an + jnp.float32(margin),
                                     jnp.float32(0.0))


def _pick_block(batch, requested=None):
    if requested is not None:
        if batch % requested != 0:
            raise ValueError(f"block={requested} must divide batch={batch}")
        return requested
    # Prefer MXU-filling tiles (256+ feeds v6e/v7x's 256-wide MXU); fall back to smaller
    # divisors, and finally to a single full-batch tile if nothing divides.
    for cand in (512, 256, 128, 64, 32, 16, 8):
        if cand <= batch and batch % cand == 0:
            return cand
    return batch


def triplet_loss(anchor, positive, margin=MARGIN, block=None):
    B, D = anchor.shape
    assert positive.shape == (B, D)
    anchor = anchor.astype(jnp.float32)
    positive = positive.astype(jnp.float32)

    blk = _pick_block(B, block)
    n_tiles = B // blk
    # Note: per-step VMEM ~ 3 arrays x 2 buffers x blk*D*4B; for very large D the
    # contraction dim should additionally be chunked to stay under the scoped VMEM
    # limit (32 MiB default, 64 MiB physical per TC on v7x).

    kernel = functools.partial(_triplet_loss_kernel,
                               margin=float(margin), eps=float(EPS))
    hinge = pl.pallas_call(
        kernel,
        out_shape=jax.ShapeDtypeStruct((B, 1), jnp.float32),
        grid_spec=pltpu.PrefetchScalarGridSpec(
            num_scalar_prefetch=0,
            grid=(n_tiles, n_tiles),
            in_specs=[
                pl.BlockSpec((blk, D), lambda i, k: (i, 0)),   # anchor row tile
                pl.BlockSpec((blk, D), lambda i, k: (i, 0)),   # positive row tile
                pl.BlockSpec((blk, D), lambda i, k: (k, 0)),   # anchor negatives tile
            ],
            out_specs=pl.BlockSpec((blk, 1), lambda i, k: (i, 0)),
            scratch_shapes=[pltpu.VMEM((blk, 1), jnp.float32)],   # running min of d_an^2
        ),
        compiler_params=pltpu.CompilerParams(
            dimension_semantics=("parallel", "arbitrary")),
    )(anchor, positive, anchor)
    return jnp.mean(hinge)


def triplet_loss_ref(anchor, positive, margin=MARGIN):
    """Pure-JAX reference matching the PyTorch forward, for validation."""
    a = anchor.astype(jnp.float32)
    p = positive.astype(jnp.float32)
    d_ap = jnp.sqrt(jnp.sum((a - p + EPS) ** 2, axis=-1))
    diff = a[:, None, :] - a[None, :, :] + EPS
    d_aa = jnp.sqrt(jnp.sum(diff * diff, axis=-1))
    B = a.shape[0]
    d_aa = jnp.where(jnp.eye(B, dtype=bool), jnp.inf, d_aa)
    d_an = jnp.min(d_aa, axis=-1)
    return jnp.mean(jnp.maximum(d_ap - d_an + margin, 0.0))


if __name__ == "__main__":
    key = jax.random.PRNGKey(0)
    k1, k2 = jax.random.split(key)

    # Test 1: multi-tile grid (2 x 2) exercising accumulation + diagonal-tile masking.
    B, D = 64, 128
    anchor = jax.random.normal(k1, (B, D), dtype=jnp.float32)
    positive = anchor + 1.25 * jax.random.normal(k2, (B, D), dtype=jnp.float32)
    loss = triplet_loss(anchor, positive, block=32)
    jax.block_until_ready(loss)
    ref = triplet_loss_ref(anchor, positive)
    # Tolerance allows for MXU multi-pass f32 precision differences vs. the VPU reference.
    assert jnp.allclose(loss, ref, rtol=2e-2, atol=2e-2), (loss, ref)

    # Test 2: non-power-of-two batch, automatic tile selection (tile=8, grid 3 x 3).
    B2, D2 = 24, 256
    a2 = jax.random.normal(jax.random.PRNGKey(1), (B2, D2), dtype=jnp.float32)
    p2 = a2 + 1.3 * jax.random.normal(jax.random.PRNGKey(2), (B2, D2), dtype=jnp.float32)
    loss2 = triplet_loss(a2, p2)
    jax.block_until_ready(loss2)
    ref2 = triplet_loss_ref(a2, p2)
    assert jnp.allclose(loss2, ref2, rtol=2e-2, atol=2e-2), (loss2, ref2)

    print("KERNEL_OK")
</pallas_src>

<mosaic_0001>
module attributes {stable_mosaic.version = 11 : i64} {
  func.func @_triplet_loss_kernel(%arg0: i32, %arg1: i32, %arg2: memref<32x128xf32, #tpu.memory_space<vmem>>, %arg3: memref<32x128xf32, #tpu.memory_space<vmem>>, %arg4: memref<32x128xf32, #tpu.memory_space<vmem>>, %arg5: memref<32x1xf32, #tpu.memory_space<vmem>>, %arg6: memref<32x1xf32, #tpu.memory_space<vmem>>) attributes {dimension_semantics = [#tpu.dimension_semantics<parallel>, #tpu.dimension_semantics<arbitrary>], iteration_bounds = array<i64: 2, 2>, scalar_prefetch = 0 : i64, scratch_operands = 1 : i64, tpu.core_type = #tpu.core_type<tc>, window_params = [{transform_indices = @transform_0, window_bounds = array<i64: 32, 128>}, {transform_indices = @transform_1, window_bounds = array<i64: 32, 128>}, {transform_indices = @transform_2, window_bounds = array<i64: 32, 128>}, {transform_indices = @transform_3, window_bounds = array<i64: 32, 1>}]} {
    %c0 = arith.constant 0 : index
    %c0_0 = arith.constant 0 : index
    %0 = vector.load %arg2[%c0, %c0_0] : memref<32x128xf32, #tpu.memory_space<vmem>>, vector<32x128xf32>
    %c0_1 = arith.constant 0 : index
    %c0_2 = arith.constant 0 : index
    %1 = vector.load %arg4[%c0_1, %c0_2] : memref<32x128xf32, #tpu.memory_space<vmem>>, vector<32x128xf32>
    %c0_i32 = arith.constant 0 : i32
    %2 = arith.cmpi eq, %arg1, %c0_i32 : i32
    %3 = arith.extui %2 : i1 to i32
    %c0_i32_3 = arith.constant 0 : i32
    %4 = arith.cmpi ne, %3, %c0_i32_3 : i32
    scf.if %4 {
      %cst_19 = arith.constant 0x7F800000 : f32
      %44 = vector.broadcast %cst_19 : f32 to vector<32x1xf32>
      %c0_20 = arith.constant 0 : index
      %c0_21 = arith.constant 0 : index
      %45 = vector.load %arg6[%c0_20, %c0_21] : memref<32x1xf32, #tpu.memory_space<vmem>>, vector<32x1xf32>
      tpu.vector_store %arg6[%c0_20, %c0_21], %44 {strides = array<i32>} : memref<32x1xf32, #tpu.memory_space<vmem>>, vector<32x1xf32>,
    } else {
    }
    %cst = arith.constant dense<0.000000e+00> : vector<32x32xf32>
    %5 = tpu.matmul %0, %1, %cst {dimension_numbers = #tpu.dot_dimension_numbers<[1], [1], [0], [0], [0, 0, 1, 0], [], []>, precision = #tpu.contract_precision<fp32>} : vector<32x128xf32>, vector<32x128xf32>, vector<32x32xf32> -> vector<32x32xf32>
    %6 = arith.mulf %0, %0 : vector<32x128xf32>
    %cst_4 = arith.constant dense<0.000000e+00> : vector<32xf32>
    %7 = vector.multi_reduction <add>, %6, %cst_4 [1] : vector<32x128xf32> to vector<32xf32>
    %8 = vector.shape_cast %7 : vector<32xf32> to vector<32x1xf32>
    %cst_5 = arith.constant dense<0.000000e+00> : vector<32xf32>
    %9 = vector.multi_reduction <add>, %0, %cst_5 [1] : vector<32x128xf32> to vector<32xf32>
    %10 = vector.shape_cast %9 : vector<32xf32> to vector<32x1xf32>
    %11 = arith.mulf %1, %1 : vector<32x128xf32>
    %cst_6 = arith.constant dense<0.000000e+00> : vector<32xf32>
    %12 = vector.multi_reduction <add>, %11, %cst_6 [1] : vector<32x128xf32> to vector<32xf32>
    %13 = vector.shape_cast %12 : vector<32xf32> to vector<1x32xf32>
    %cst_7 = arith.constant dense<0.000000e+00> : vector<32xf32>
    %14 = vector.multi_reduction <add>, %1, %cst_7 [1] : vector<32x128xf32> to vector<32xf32>
    %15 = vector.shape_cast %14 : vector<32xf32> to vector<1x32xf32>
    %16 = vector.broadcast %8 : vector<32x1xf32> to vector<32x32xf32>
    %17 = vector.broadcast %13 : vector<1x32xf32> to vector<32x32xf32>
    %18 = arith.addf %16, %17 : vector<32x32xf32>
    %cst_8 = arith.constant 2.000000e+00 : f32
    %19 = vector.broadcast %cst_8 : f32 to vector<32x32xf32>
    %20 = arith.mulf %19, %5 : vector<32x32xf32>
    %21 = arith.subf %18, %20 : vector<32x32xf32>
    %cst_9 = arith.constant 2.000000e+00 : f32
    %cst_10 = arith.constant 9.99999997E-7 : f32
    %22 = arith.mulf %cst_9, %cst_10 : f32
    %23 = vector.broadcast %10 : vector<32x1xf32> to vector<32x32xf32>
    %24 = vector.broadcast %15 : vector<1x32xf32> to vector<32x32xf32>
    %25 = arith.subf %23, %24 : vector<32x32xf32>
    %26 = vector.broadcast %22 : f32 to vector<32x32xf32>
    %27 = arith.mulf %26, %25 : vector<32x32xf32>
    %28 = arith.addf %21, %27 : vector<32x32xf32>
    %cst_11 = arith.constant 1.280000e+02 : f32
    %cst_12 = arith.constant 9.99999997E-7 : f32
    %29 = arith.mulf %cst_11, %cst_12 : f32
    %cst_13 = arith.constant 9.99999997E-7 : f32
    %30 = arith.mulf %29, %cst_13 : f32
    %31 = vector.broadcast %30 : f32 to vector<32x32xf32>
    %32 = arith.addf %28, %31 : vector<32x32xf32>
    %cst_14 = arith.constant 0.000000e+00 : f32
    %33 = vector.broadcast %cst_14 : f32 to vector<32x32xf32>
    %34 = arith.maximumf %32, %33 : vector<32x32xf32>
    %35 = arith.cmpi eq, %arg0, %arg1 : i32
    %36 = arith.extui %35 : i1 to i32
    %c0_i32_15 = arith.constant 0 : i32
    %37 = arith.cmpi ne, %36, %c0_i32_15 : i32
    scf.if %37 {
      %44 = tpu.iota {dimensions = array<i32: 0>} : vector<32x32xi32>
      %45 = tpu.iota {dimensions = array<i32: 1>} : vector<32x32xi32>
      %46 = arith.cmpi eq, %44, %45 : vector<32x32xi32>
      %cst_19 = arith.constant 0x7F800000 : f32
      %47 = vector.broadcast %cst_19 : f32 to vector<32x32xf32>
      %48 = arith.select %46, %47, %34 : vector<32x32xi1>, vector<32x32xf32>
      %c0_20 = arith.constant 0 : index
      %c0_21 = arith.constant 0 : index
      %49 = vector.load %arg6[%c0_20, %c0_21] : memref<32x1xf32, #tpu.memory_space<vmem>>, vector<32x1xf32>
      %cst_22 = arith.constant dense<0x7F800000> : vector<32xf32>
      %50 = vector.multi_reduction <minimumf>, %48, %cst_22 [1] : vector<32x32xf32> to vector<32xf32>
      %51 = vector.shape_cast %50 : vector<32xf32> to vector<32x1xf32>
      %52 = arith.minimumf %49, %51 : vector<32x1xf32>
      %c0_23 = arith.constant 0 : index
      %c0_24 = arith.constant 0 : index
      %53 = vector.load %arg6[%c0_23, %c0_24] : memref<32x1xf32, #tpu.memory_space<vmem>>, vector<32x1xf32>
      tpu.vector_store %arg6[%c0_23, %c0_24], %52 {strides = array<i32>} : memref<32x1xf32, #tpu.memory_space<vmem>>, vector<32x1xf32>,
    } else {
    }
    %38 = arith.cmpi ne, %arg0, %arg1 : i32
    %39 = arith.extui %38 : i1 to i32
    %c0_i32_16 = arith.constant 0 : i32
    %40 = arith.cmpi ne, %39, %c0_i32_16 : i32
    scf.if %40 {
      %c0_19 = arith.constant 0 : index
      %c0_20 = arith.constant 0 : index
      %44 = vector.load %arg6[%c0_19, %c0_20] : memref<32x1xf32, #tpu.memory_space<vmem>>, vector<32x1xf32>
      %cst_21 = arith.constant dense<0x7F800000> : vector<32xf32>
      %45 = vector.multi_reduction <minimumf>, %34, %cst_21 [1] : vector<32x32xf32> to vector<32xf32>
      %46 = vector.shape_cast %45 : vector<32xf32> to vector<32x1xf32>
      %47 = arith.minimumf %44, %46 : vector<32x1xf32>
      %c0_22 = arith.constant 0 : index
      %c0_23 = arith.constant 0 : index
      %48 = vector.load %arg6[%c0_22, %c0_23] : memref<32x1xf32, #tpu.memory_space<vmem>>, vector<32x1xf32>
      tpu.vector_store %arg6[%c0_22, %c0_23], %47 {strides = array<i32>} : memref<32x1xf32, #tpu.memory_space<vmem>>, vector<32x1xf32>,
    } else {
    }
    %c1_i32 = arith.constant 1 : i32
    %41 = arith.cmpi eq, %arg1, %c1_i32 : i32
    %42 = arith.extui %41 : i1 to i32
    %cst_17 = arith.constant 9.99999997E-7 : f32
    %c0_i32_18 = arith.constant 0 : i32
    %43 = arith.cmpi ne, %42, %c0_i32_18 : i32
    scf.if %43 {
      %c0_19 = arith.constant 0 : index
      %c0_20 = arith.constant 0 : index
      %44 = vector.load %arg3[%c0_19, %c0_20] : memref<32x128xf32, #tpu.memory_space<vmem>>, vector<32x128xf32>
      %45 = arith.subf %0, %44 : vector<32x128xf32>
      %46 = vector.broadcast %cst_17 : f32 to vector<32x128xf32>
      %47 = arith.addf %45, %46 : vector<32x128xf32>
      %48 = arith.mulf %47, %47 : vector<32x128xf32>
      %cst_21 = arith.constant dense<0.000000e+00> : vector<32xf32>
      %49 = vector.multi_reduction <add>, %48, %cst_21 [1] : vector<32x128xf32> to vector<32xf32>
      %50 = vector.shape_cast %49 : vector<32xf32> to vector<32x1xf32>
      %51 = math.sqrt %50 : vector<32x1xf32>
      %c0_22 = arith.constant 0 : index
      %c0_23 = arith.constant 0 : index
      %52 = vector.load %arg6[%c0_22, %c0_23] : memref<32x1xf32, #tpu.memory_space<vmem>>, vector<32x1xf32>
      %53 = math.sqrt %52 : vector<32x1xf32>
      %54 = arith.subf %51, %53 : vector<32x1xf32>
      %cst_24 = arith.constant 2.000000e-01 : f32
      %55 = vector.broadcast %cst_24 : f32 to vector<32x1xf32>
      %56 = arith.addf %54, %55 : vector<32x1xf32>
      %cst_25 = arith.constant 0.000000e+00 : f32
      %57 = vector.broadcast %cst_25 : f32 to vector<32x1xf32>
      %58 = arith.maximumf %56, %57 : vector<32x1xf32>
      %c0_26 = arith.constant 0 : index
      %c0_27 = arith.constant 0 : index
      %59 = vector.load %arg5[%c0_26, %c0_27] : memref<32x1xf32, #tpu.memory_space<vmem>>, vector<32x1xf32>
      tpu.vector_store %arg5[%c0_26, %c0_27], %58 {strides = array<i32>} : memref<32x1xf32, #tpu.memory_space<vmem>>, vector<32x1xf32>,
    } else {
    }
    return
  }
  func.func @transform_0(%arg0: i32, %arg1: i32) -> (i32, i32) {
    %c0_i32 = arith.constant 0 : i32
    %c0_i32_0 = arith.constant 0 : i32
    return %arg0, %c0_i32 : i32, i32
  }
  func.func @transform_1(%arg0: i32, %arg1: i32) -> (i32, i32) {
    %c0_i32 = arith.constant 0 : i32
    %c0_i32_0 = arith.constant 0 : i32
    return %arg0, %c0_i32 : i32, i32
  }
  func.func @transform_2(%arg0: i32, %arg1: i32) -> (i32, i32) {
    %c0_i32 = arith.constant 0 : i32
    %c0_i32_0 = arith.constant 0 : i32
    return %arg1, %c0_i32 : i32, i32
  }
  func.func @transform_3(%arg0: i32, %arg1: i32) -> (i32, i32) {
    %c0_i32 = arith.constant 0 : i32
    %c0_i32_0 = arith.constant 0 : i32
    return %arg0, %c0_i32 : i32, i32
  }
}

</mosaic_0001>

<bundles_post_ra>
// kernel: tpu_custom_call.1
= control target key start
LH: loop header
LB: loop body
LE: loop exit
PB: predicated region body
PF: predicated region fallthrough
CT: control target
= control target key end

     0   :  { %s2423_s0 = inlined_call_operand.hbm [shape: f32[64,128], index: 0, kind: input, shape index: {}]   ;;  %s2424_s1 = inlined_call_operand.hbm [shape: f32[64,128], index: 1, kind: input, shape index: {}]   ;;  %s2425_s2 = inlined_call_operand.hbm [shape: f32[64,128], index: 2, kind: input, shape index: {}]   ;;  %s2426_s3 = inlined_call_operand.vmem [shape: f32[64,1], index: 3, kind: output, shape index: {}]  }
   0x1   :  { %2436 = sst [smem:[#allocation12_spill]] %s2423_s0 }
   0x2   :  { %2437 = sst [smem:[#allocation13_spill]] %s2424_s1 }
   0x3   :  { %8 = vsyncpa [#allocation4], 0 }
   0x4   :  { %10 = vsyncpa [#allocation4 + $0x1], 0 }
   0x5   :  { %11 = vsyncpa [#allocation6], 0 }
   0x6   :  { %13 = vsyncpa [#allocation6 + $0x1], 0  ;;  %s1929_s12 = smov 0   ;;  %s1931_s13 = smov 0  }
   0x7   :  { %s1933_s14 = smov 0   ;;  %s1935_s15 = smov 0  }
   0x8   :  { %s1937_s16 = smov 0   ;;  %s1939_s17 = smov 0  }
   0x9   :  { %s1941_s18 = smov 0   ;;  %s1943_s19 = smov 0  }
   0xa   :  { %s1945_s20 = smov 0   ;;  %s1947_s21 = smov 0  }
   0xb   :  { %s1949_s22 = smov 0  }
   0xc LB: > { %s2427_s23 = sadd.s32 4294967295, %s1901_s22   ;;  %p45_p0 = scmp.ne.s32.totalorder %s1881_s17, %s1877_s16  ;;  %s1901_s22 = sphi %s1949_s22, %s19_s22   ;;  %s1897_s21 = sphi %s1947_s21, %s2469_s21   ;;  %s1893_s20 = sphi %s1945_s20, %s2468_s20   ;;  %s1889_s19 = sphi %s1943_s19, %s2467_s19   ;;  %s1885_s18 = sphi %s1941_s18, %s2466_s18   ;;  %s1881_s17 = sphi %s1939_s17, %s2465_s17   ;;  %s1877_s16 = sphi %s1937_s16, %s2464_s16   ;;  %s1873_s15 = sphi %s1935_s15, %s2463_s15   ;;  %s1869_s14 = sphi %s1933_s14, %s2462_s14   ;;  %s1865_s13 = sphi %s1931_s13, %s2461_s13   ;;  %s1861_s12 = sphi %s1929_s12, %s2460_s12  }
   0xd   : > { %p2429_p1 = scmp.eq.s32.totalorder %s1901_s22, 0  ;;  %p51_p2 = scmp.ne.s32.totalorder %s1877_s16, %s1873_s15 }
   0xe   : > { %p1991_p3 = scmp.eq.s32.totalorder %s2427_s23, 0  ;;  %p2428_p5 = scmp.lt.s32.totalorder %s1901_s22, 4 }
   0xf   : > { %p47_p4 = por %p2429_p1, %p45_p0  ;;  %s153_s28 = sand.u32 1, %s1881_s17  }
  0x10   : > { %p2000_p6 = por %p1991_p3, %p51_p2  ;;  %s2007_s29 = sshll.u32 %s153_s28, 5 }
  0x11   : > { %s1386_s30 = sshll.u32 %s1897_s21, 9  ;;  %p2012_p7 = pnand %p2428_p5, %p47_p4 }
  0x12   : > { %s2439_s27 = scalar_select %p2000_p6, 1, 0 }
  0x13   : > { %s174_s5 = sand.u32 1, %s1901_s22   ;;  %s2441_s1 = sld [smem:[#allocation13_spill]] }
  0x14   : > { %s178_s9 = scalar_lea.vmem [#allocation5], %s2007_s29  ;;  %s2029_s11 = scalar_lea.sflag [#allocation6], %s174_s5 }
  0x15   : > { %s185_s10 = sshll.u32 %s178_s9, 4  ;;  %p1715_p11 = pneg %p2012_p7  ;;  %s2026_s10 = int_to_ptr.vmem [resolvable:$true] %s185_s10 }
  0x19   : > { %s2022_s8 = scalar_lea.hbm %s2441_s1, %s1386_s30  ;;  %s1718_s23 = scalar_lea.hbm %s2441_s1, 1024 }
  0x1a   : > { %s1713_s15 = scalar_lea.hbm %s2022_s8, 512  ;;  %p1719_p0 = scmp.lt.u32.totalorder %s2022_s8, %s2441_s1 }
  0x1b   : > { %p1714_p10 = scmp.ne.s32.totalorder %s2022_s8, %s1713_s15  ;;  %p1720_p2 = scmp.lt.u32.totalorder %s1718_s23, %s1713_s15 }
  0x1c   : > { %p1722_p5 = scmp.lt.u32.totalorder %s1713_s15, %s2022_s8 }
  0x1d   : > { %p1716_p12 = pnand %p1715_p11, %p1714_p10  ;;  %p1721_p4 = por %p1720_p2, %p1719_p0 }
  0x1f   : > { %p1717_p13 = pneg %p1716_p12  ;;  %p1723_p1 = por %p1722_p5, %p1721_p4 }
  0x21   : > { %p1724_p8 = pnand %p1723_p1, %p1717_p13 }
  0x23   : > { %1727 = shalt.err (!%p1724_p8)
}
  0x24   : > { %s1728_s5 = scalar_lea.vmem %s2026_s10, 512  ;;  %s1903_s6 = smov [#allocation5]  }
  0x25   : > { %p1729_p10 = scmp.ne.s32.totalorder %s2026_s10, %s1728_s5  ;;  %s1733_s7 = sshll.u32 %s1903_s6, 4  ;;  %s1734_s7 = int_to_ptr.vmem [resolvable:$false] %s1733_s7 }
  0x26   : > { %s1735_s25 = scalar_lea.vmem %s1734_s7, 1024  ;;  %p1736_p6 = scmp.lt.s32.totalorder %s2026_s10, %s1734_s7 }
  0x27   : > { %p1731_p12 = pnand %p1729_p10, %p1715_p11  ;;  %p1737_p0 = scmp.lt.s32.totalorder %s1735_s25, %s1728_s5 }
  0x29   : > { %p1732_p9 = pneg %p1731_p12  ;;  %p1738_p2 = por %p1737_p0, %p1736_p6 }
  0x2b   : > { %p1739_p5 = pnand %p1738_p2, %p1732_p9 }
  0x2d   : > { %1742 = shalt.err (!%p1739_p5)
}
  0x2e   : > { %s2431_s23 = smov 128   ;;  %s2433_s15 = smov 8  }
  0x2f   : > { %1601 = dma.hbm_to_vmem [thread:$0]  (!%p2012_p7), %s2022_s8, 512, %s2026_s10, %s2029_s11, %s2431_s23, %s2431_s23, %s2433_s15  }
  0x30   : > { %p2442_p1 = scmp.lt.s32.totalorder %s1901_s22, 5  ;;  %p2443_p6 = scmp.ge.s32.totalorder %s1901_s22, 1 }
  0x31   : > { %s2445_s0 = sld [smem:[#allocation12_spill]]  ;;  %s157_s25 = scalar_lea.vmem [#allocation3], %s2007_s29 }
  0x32   : > { %p2064_p8 = pnand %p2443_p6, %p2442_p1  ;;  %s164_s24 = sshll.u32 %s157_s25, 4  ;;  %s2076_s24 = int_to_ptr.vmem [resolvable:$true] %s164_s24 }
  0x33   : > { %s2080_s8 = scalar_lea.sflag [#allocation4], %s153_s28 }
  0x34   : > { %s2444_s9 = scalar_select %p2064_p8, 1, 0 }
  0x37   : > { %s2073_s7 = scalar_lea.hbm %s2445_s0, %s1386_s30  ;;  %s1748_s6 = scalar_lea.hbm %s2445_s0, 1024 }
  0x38   : > { %s1743_s10 = scalar_lea.hbm %s2073_s7, 512  ;;  %p1749_p10 = scmp.lt.u32.totalorder %s2073_s7, %s2445_s0 }
  0x39   : > { %p1744_p9 = scmp.ne.s32.totalorder %s2073_s7, %s1743_s10  ;;  %p1750_p12 = scmp.lt.u32.totalorder %s1748_s6, %s1743_s10 }
  0x3a   : > { %p1752_p2 = scmp.lt.u32.totalorder %s1743_s10, %s2073_s7 }
  0x3b   : > { %p1746_p13 = pnand %p1744_p9, %p1715_p11  ;;  %p1751_p0 = por %p1750_p12, %p1749_p10 }
  0x3d   : > { %p1747_p4 = pneg %p1746_p13  ;;  %p1753_p5 = por %p1752_p2, %p1751_p0 }
  0x3f   : > { %p1754_p1 = pnand %p1753_p5, %p1747_p4 }
  0x41   : > { %1757 = shalt.err (!%p1754_p1)
}
  0x42   : > { %s1758_s28 = scalar_lea.vmem %s2076_s24, 512  ;;  %s1906_s29 = smov [#allocation3]  }
  0x43   : > { %p1759_p6 = scmp.ne.s32.totalorder %s2076_s24, %s1758_s28  ;;  %s1763_s25 = sshll.u32 %s1906_s29, 4  ;;  %s1764_s25 = int_to_ptr.vmem [resolvable:$false] %s1763_s25 }
  0x44   : > { %s1765_s23 = scalar_lea.vmem %s1764_s25, 1024  ;;  %p1766_p8 = scmp.lt.s32.totalorder %s2076_s24, %s1764_s25 }
  0x45   : > { %p1761_p9 = pnand %p1759_p6, %p1715_p11  ;;  %p1767_p10 = scmp.lt.s32.totalorder %s1765_s23, %s1758_s28 }
  0x47   : > { %p1762_p13 = pneg %p1761_p9  ;;  %p1768_p12 = por %p1767_p10, %p1766_p8 }
  0x49   : > { %p1769_p0 = pnand %p1768_p12, %p1762_p13 }
  0x4b   : > { %1772 = shalt.err (!%p1769_p0)
}
  0x4c   : > { %s2446_s15 = smov 8   ;;  %s2447_s10 = smov 128  }
  0x4d   : > { %1598 = dma.hbm_to_vmem [thread:$0]  (!%p2012_p7), %s2073_s7, 512, %s2076_s24, %s2080_s8, %s2447_s10, %s2447_s10, %s2446_s15  }
  0x4e   : > { %s28_s4 = sadd.s32 1, %s1893_s20  ;;  %s90_s5 = sadd.s32 1, %s1869_s14 }
  0x4f   : > { %p29_p11 = scmp.ge.s32.totalorder %s28_s4, 2  ;;  %p97_p8 = scmp.ne.s32.totalorder %s1869_s14, %s1865_s13 }
  0x50   : > { %p103_p4 = scmp.ne.s32.totalorder %s1865_s13, %s1861_s12  ;;  %s197_s30 = sand.u32 1, %s1869_s14  }
  0x51   : > { %s2471_s4 = smov (%p29_p11, %s28_s4), 0  ;;  %s2449_s6 = sadd.s32 1, %s1897_s21 }
  0x52   : > { %2448 = sst [smem:[#allocation11_spill]] %s2471_s4  ;;  %s2473_s6 = smov (!%p29_p11, %s2449_s6), %s1897_s21 }
  0x53   : > { %s87_s28 = ssub.s32 %s1893_s20, %s2471_s4  ;;  %p2450_p2 = scmp.eq.s32.totalorder %s1901_s22, 0 }
  0x54   : > { %p33_p5 = scmp.ge.s32.totalorder %s2473_s6, 2  ;;  %p88_p1 = scmp.eq.s32.totalorder %s87_s28, 0 }
  0x55   : > { %p2125_p7 = por %p97_p8, %p2450_p2  ;;  %p2131_p6 = por %p103_p4, %p1991_p3 }
  0x56   : > { %s1371_s7 = sshll.u32 %s197_s30, 5  ;;  %s2475_s6 = smov (%p33_p5, %s2473_s6), 0 }
  0x57   : > { %s2138_s8 = scalar_select %p88_p1, %s1869_s14, %s90_s5  }
  0x58   : > { %s35_s29 = ssub.s32 %s1897_s21, %s2475_s6  ;;  %s1388_s25 = sshll.u32 %s1893_s20, 9 }
  0x59   : > { %p36_p9 = scmp.eq.s32.totalorder %s35_s29, 0  ;;  %s2146_s1 = scalar_lea.hbm %s2425_s2, %s1388_s25 }
  0x5a   : > { %s199_s26 = scalar_lea.vmem [#allocation7], %s1371_s7  ;;  %s2453_s30 = sadd.s32 1, %s1881_s17 }
  0x5b   : > { %s206_s28 = sshll.u32 %s199_s26, 4  ;;  %p2454_p3 = scmp.lt.s32.totalorder %s1901_s22, 4  ;;  %s2153_s28 = int_to_ptr.vmem [resolvable:$true] %s206_s28 }
  0x5c   : > { %s2151_s4 = scalar_select %p36_p9, %s1881_s17, %s2453_s30  }
  0x5d   : > { %p2159_p13 = pnand %p2454_p3, %p2125_p7  ;;  %s1773_s0 = scalar_lea.hbm %s2146_s1, 512 }
  0x5e   : > { %p1774_p10 = scmp.ne.s32.totalorder %s2146_s1, %s1773_s0  ;;  %s1778_s25 = scalar_lea.hbm %s2425_s2, 1024 }
  0x5f   : > { %p1775_p12 = pneg %p2159_p13  ;;  %p1779_p8 = scmp.lt.u32.totalorder %s2146_s1, %s2425_s2 }
  0x60   : > { %p1780_p4 = scmp.lt.u32.totalorder %s1778_s25, %s1773_s0  ;;  %p1782_p7 = scmp.lt.u32.totalorder %s1773_s0, %s2146_s1 }
  0x61   : > { %p1776_p0 = pnand %p1775_p12, %p1774_p10 }
  0x62   : > { %p1781_p2 = por %p1780_p4, %p1779_p8 }
  0x63   : > { %p1777_p11 = pneg %p1776_p0 }
  0x64   : > { %p1783_p5 = por %p1782_p7, %p1781_p2 }
  0x66   : > { %p1784_p1 = pnand %p1783_p5, %p1777_p11 }
  0x68   : > { %1787 = shalt.err (!%p1784_p1)
}
  0x69   : > { %s1788_s26 = scalar_lea.vmem %s2153_s28, 512  ;;  %s1907_s30 = smov [#allocation7]  }
  0x6a   : > { %p1789_p9 = scmp.ne.s32.totalorder %s2153_s28, %s1788_s26  ;;  %s1793_s7 = sshll.u32 %s1907_s30, 4  ;;  %s1794_s7 = int_to_ptr.vmem [resolvable:$false] %s1793_s7 }
  0x6b   : > { %s1795_s29 = scalar_lea.vmem %s1794_s7, 1024  ;;  %p1796_p0 = scmp.lt.s32.totalorder %s2153_s28, %s1794_s7 }
  0x6c   : > { %p1791_p3 = pnand %p1789_p9, %p1775_p12  ;;  %p1797_p8 = scmp.lt.s32.totalorder %s1795_s29, %s1788_s26 }
  0x6e   : > { %p1792_p10 = pneg %p1791_p3  ;;  %p1798_p4 = por %p1797_p8, %p1796_p0 }
  0x70   : > { %p1799_p2 = pnand %p1798_p4, %p1792_p10 }
  0x72   : > { %1802 = shalt.err (!%p1799_p2)
}
  0x73   : > { %1604 = dma.hbm_to_vmem [thread:$0]  (!%p2159_p13), %s2146_s1, 512, %s2153_s28, %s2029_s11, %s2447_s10, %s2447_s10, %s2446_s15  }
  0x74   : > { %p2456_p12 = scmp.ne.s32.totalorder %s2444_s9, 0 }
  0x75   : > { %s220_s0 = sand.u32 (!%p2456_p12), 1, %s1877_s16   ;;  %p2457_p11 = scmp.ne.s32.totalorder (!%p2456_p12), %s2439_s27, 0 }
  0x76   : > { %218 = sbr.rel (%p2456_p12) target bundleno = 904 (0x388), region = 32  ;;  %s1375_s25 = sshll.u32 (!%p2456_p12), %s220_s0, 5 }
  0x77   : > { %s221_s24 = scalar_lea.sflag (!%p2456_p12), [#allocation4], %s220_s0  ;;  %s224_s23 = scalar_lea.vmem (!%p2456_p12), [#allocation3], %s1375_s25 }
  0x7d   : > { %1848 = dma.done.wait (%p2457_p11), %s221_s24, 512  }
  0x7e   : > { %1850 = vsyncadd (%p2457_p11), %s221_s24, 4294966784  ;;  %s2458_s5 = sadd.s32 4294967295, %s1901_s22   ;;  %s2201_s1 = scalar_lea.vmem [#allocation5], %s1375_s25 }
  0x7f   : > { %s229_s26 = sand.u32 1, %s2458_s5  }
  0x80   : > { %s230_s30 = scalar_lea.sflag [#allocation6], %s229_s26 }
  0x81   : > { %1852 = dma.done.wait (%p2457_p11), %s230_s30, 512  }
  0x82   : > { %1854 = vsyncadd (%p2457_p11), %s230_s30, 4294966784  ;;  %s240_s11 = sand.u32 1, %s1865_s13  }
  0x83   : > { %s1377_s9 = sshll.u32 %s240_s11, 5 }
  0x84   : > { %s242_s15 = scalar_lea.vmem [#allocation7], %s1377_s9 }
  0x85   : > { %1856 = dma.done.wait (%p2131_p6), %s230_s30, 512  }
  0x86   : > { %1858 = vsyncadd (%p2131_p6), %s230_s30, 4294966784  ;;  %s1378_s10 = sshll.u32 %s1889_s19, 2  ;;  %v2218_v0 = vld [vmem:[%s224_s23] sm:$0xff]  ;;  %v2220_v1 = vld [vmem:[%s224_s23 + $0x8] sm:$0xff]  ;;  %p1380_p6 = scmp.ne.s32.totalorder %s1885_s18, 0 }
  0x87   : > { %p279_p13 = scmp.lt.s32.totalorder %s1378_s10, 7  ;;  %v2222_v2 = vld [vmem:[%s224_s23 + $0x10] sm:$0xff]  ;;  %v2224_v3 = vld [vmem:[%s224_s23 + $0x18] sm:$0xff]  ;;  %v288_v4 = vld [vmem:[%s242_s15] sm:$0xff]  ;;  %vm296_vm0 = vcmask (!%p1380_p6), 7168   ;;  %v1908_v8 = vmov (!%p1380_p6), inf  }
  0x88   : > { %v2226_v5 = vld [vmem:[%s242_s15 + $0x8] sm:$0xff]  ;;  %v2228_v6 = vld [vmem:[%s242_s15 + $0x10] sm:$0xff]  ;;  %v2230_v7 = vld [vmem:[%s242_s15 + $0x18] sm:$0xff]  ;;  %295 = sbr.rel (%p1380_p6) target bundleno = 143 (0x8f), region = 48  ;;  %297 = vst.msk [vmem:[#allocation2] sm:$0xff] (!%p1380_p6), %vm296_vm0, %v1908_v8 }
  0x89   : > { %s2477_s10 = smov (!%p279_p13, %s1378_s10), 7  ;;  %298 = vst.msk [vmem:[#allocation2 + $0x8] sm:$0xff] (!%p1380_p6), %vm296_vm0, %v1908_v8  ;;  %299 = vst.msk [vmem:[#allocation2 + $0x10] sm:$0xff] (!%p1380_p6), %vm296_vm0, %v1908_v8 }
  0x8a   : > { %s1379_s28 = sshll.u32 %s2477_s10, 3  ;;  %300 = vst.msk [vmem:[#allocation2 + $0x18] sm:$0xff] (!%p1380_p6), %vm296_vm0, %v1908_v8 }
  0x8b   : > { %s2216_s27 = scalar_lea.vmem %s2426_s3, %s1379_s28 }
  0x8f PF: > { %v302_v9 = vand.u32 4294901760, %v288_v4  ;;  %v305_v10 = vand.u32 4294901760, %v2226_v5  ;;  %v308_v11 = vand.u32 4294901760, %v2228_v6  ;;  %v311_v12 = vand.u32 4294901760, %v2230_v7  ;;  %947 = vadd.xlane.f32.xlu1 %v288_v4  ;;  %p1381_p7 = scmp.ne.s32.totalorder %s1889_s19, %s1885_s18 }
  0x90   : > { %v2237_v13 = vand.u32 4294901760, %v2218_v0  ;;  %v2240_v14 = vand.u32 4294901760, %v2220_v1  ;;  %v2262_v22 = vand.u32 4294901760, %v2222_v2  ;;  %v2273_v26 = vand.u32 4294901760, %v2224_v3 }
  0x91   : > { %v2242_v15 = vpack.c.bf16 %v305_v10, %v302_v9  ;;  %v2244_v16 = vpack.c.bf16 %v311_v12, %v308_v11  ;;  %v2246_v17 = vsub.f32 %v288_v4, %v302_v9  ;;  %v2249_v18 = vsub.f32 %v2226_v5, %v305_v10 }
  0x92   : > { %v2253_v19 = vsub.f32 %v2218_v0, %v2237_v13  ;;  %v2256_v20 = vsub.f32 %v2228_v6, %v308_v11  ;;  %v2259_v21 = vsub.f32 %v2230_v7, %v311_v12  ;;  %v2270_v25 = vsub.f32 %v2220_v1, %v2240_v14 }
  0x93   : > { %1522 = vmatprep.subr.bf16.mxu1 %v2242_v15  ;;  %1546 = vmatprep.subr.bf16.mxu0 %v2242_v15  ;;  %v413_v23 = vand.u32 4294901760, %v2246_v17  ;;  %v420_v24 = vand.u32 4294901760, %v2249_v18  ;;  %v2287_v33 = vsub.f32 %v2222_v2, %v2262_v22  ;;  %v2292_v37 = vsub.f32 %v2224_v3, %v2273_v26 }
  0x94   : > { %1524 = vmatpush3.bf16.xpose.msra.mxu1 %v2242_v15  ;;  %1548 = vmatpush3.bf16.xpose.msra.mxu0 %v2242_v15  ;;  %v372_v27 = vand.u32 4294901760, %v2253_v19  ;;  %v427_v30 = vand.u32 4294901760, %v2256_v20  ;;  %v434_v31 = vand.u32 4294901760, %v2259_v21  ;;  %v382_v36 = vand.u32 4294901760, %v2270_v25 }
  0x95   : > { %1526 = vmatprep.subr.bf16.mxu1 %v2244_v16  ;;  %1550 = vmatprep.subr.bf16.mxu0 %v2244_v16  ;;  %v414_v28 = vsub.f32 %v2246_v17, %v413_v23  ;;  %v421_v29 = vsub.f32 %v2249_v18, %v420_v24  ;;  %v1553_v40 = vpack.c.bf16 %v420_v24, %v413_v23  ;;  %v392_v43 = vand.u32 4294901760, %v2287_v33 }
  0x96   : > { %v373_v32 = vsub.f32 %v2253_v19, %v372_v27  ;;  %1487 = vmatprep.mubr.f32.mxu0 %v372_v27  ;;  %949 = vadd.xlane.f32.xlu1 %v2226_v5  ;;  %v428_v41 = vsub.f32 %v2256_v20, %v427_v30  ;;  %v435_v42 = vsub.f32 %v2259_v21, %v434_v31  ;;  %v402_v46 = vand.u32 4294901760, %v2292_v37 }
  0x97   : > { %v415_v34 = vand.u32 4294901760, %v414_v28  ;;  %v422_v35 = vand.u32 4294901760, %v421_v29  ;;  %v935_v44 = vmul.f32 %v288_v4, %v288_v4  ;;  %v383_v45 = vsub.f32 %v2270_v25, %v382_v36 }
  0x98   : > { %v374_v38 = vand.u32 4294901760, %v373_v32  ;;  %v429_v47 = vand.u32 4294901760, %v428_v41  ;;  %v436_v48 = vand.u32 4294901760, %v435_v42  ;;  %v393_v49 = vsub.f32 %v2287_v33, %v392_v43 }
  0x99   : > { %v1529_v39 = vpack.c.bf16 %v422_v35, %v415_v34  ;;  %939 = vadd.xlane.f32.xlu0 %v935_v44  ;;  %v936_v50 = vmul.f32 %v2226_v5, %v2226_v5  ;;  %v384_v51 = vand.u32 4294901760, %v383_v45  ;;  %v403_v52 = vsub.f32 %v2292_v37, %v402_v46 }
  0x9a   : > { %1445 = vmatprep.mubr.f32.mxu1 %v374_v38  ;;  %951 = vadd.xlane.f32.xlu1 %v2228_v6  ;;  %v1533_v53 = vpack.c.bf16 %v436_v48, %v429_v47  ;;  %v1557_v54 = vpack.c.bf16 %v434_v31, %v427_v30  ;;  %v394_v55 = vand.u32 4294901760, %v393_v49  ;;  %v937_v57 = vmul.f32 %v2228_v6, %v2228_v6 }
  0x9b   : > { %v404_v56 = vand.u32 4294901760, %v403_v52  ;;  %v916_v58 = vmul.f32 %v2220_v1, %v2220_v1  ;;  %v1537_v59 = vpack.c.bf16 %v2249_v18, %v2246_v17  ;;  %v938_v60 = vmul.f32 %v2230_v7, %v2230_v7 }
  0x9c   : > { %1528 = vmatpush3.bf16.xpose.msra.mxu1 %v2244_v16  ;;  %1552 = vmatpush3.bf16.xpose.msra.mxu0 %v2244_v16  ;;  %v918_v61 = vmul.f32 %v2224_v3, %v2224_v3  ;;  %v915_v62 = vmul.f32 %v2218_v0, %v2218_v0  ;;  %v1541_v63 = vpack.c.bf16 %v2259_v21, %v2256_v20  ;;  %v959_v9 = vlaneseq }
  0x9d   : > { %1530 = vmatprep.subr.bf16.mxu1 %v1529_v39  ;;  %1554 = vmatprep.subr.bf16.mxu0 %v1553_v40  ;;  %v917_v4 = vmul.f32 %v2222_v2, %v2222_v2  ;;  %vm970_vm1 = vcmask 130112   ;;  %vm977_vm2 = vcmask 195712   ;;  %vm984_vm3 = vcmask 261312  }
  0x9e   : > { %953 = vadd.xlane.f32.xlu1 %v2230_v7  ;;  %941 = vadd.xlane.f32.xlu0 %v936_v50  ;;  %v2348_v12 = vand.u32 127, %v959_v9  ;;  %vm1082_vm5 = vcmask (!%p1381_p7), 261120   ;;  %vm1099_vm9 = vcmask (!%p1381_p7), 7168  }
  0xa0   : > { %v972_v17 = vadd.s32 4294967280, %v2348_v12 }
  0xa2   : > { %943 = vadd.xlane.f32.xlu0 %v937_v57  ;;  %921 = vadd.xlane.f32.xlu1 %v916_v58 }
  0xa3   : > { %1446 = vmatmul.mubr.f32.vlgmr.msra.gmra.mrb[0].mxu1 %v384_v51  ;;  %1488 = vmatmul.mubr.f32.vlgmr.msra.gmra.mrb[0].mxu0 %v382_v36 }
  0xa4   : > { %1532 = vmatpush3.bf16.xpose.msra.mxu1 %v1529_v39  ;;  %1556 = vmatpush3.bf16.xpose.msra.mxu0 %v1553_v40 }
  0xa5   : > { %1534 = vmatprep.subr.bf16.mxu1 %v1533_v53  ;;  %1558 = vmatprep.subr.bf16.mxu0 %v1557_v54 }
  0xa6   : > { %1448 = vmatprep.mubr.f32.mxu1 %v394_v55  ;;  %1490 = vmatprep.mubr.f32.mxu0 %v392_v43 }
  0xa7   : > { %1449 = vmatmul.mubr.f32.gmra.mrb[2].mxu1 %v404_v56  ;;  %1491 = vmatmul.mubr.f32.gmra.mrb[2].mxu0 %v402_v46 }
  0xa8   : > { %1459 = vmatprep.mubr.f32.mxu1 %v2237_v13  ;;  %1501 = vmatprep.mubr.f32.mxu0 %v2237_v13 }
  0xa9   : > { %945 = vadd.xlane.f32.xlu0 %v938_v60  ;;  %925 = vadd.xlane.f32.xlu1 %v918_v61 }
  0xac   : > { %1536 = vmatpush3.bf16.xpose.msra.mxu1 %v1533_v53  ;;  %1560 = vmatpush3.bf16.xpose.msra.mxu0 %v1557_v54 }
  0xad   : > { %1538 = vmatprep.subr.bf16.mxu1 %v1537_v59  ;;  %1562 = vmatprep.subr.bf16.mxu0 %v2242_v15 }
  0xae   : > { %919 = vadd.xlane.f32.xlu0 %v915_v62  ;;  %929 = vadd.xlane.f32.xlu1 %v2220_v1 }
  0xb2   : > { %923 = vadd.xlane.f32.xlu0 %v917_v4  ;;  %933 = vadd.xlane.f32.xlu1 %v2224_v3 }
  0xb3   : > { %1460 = vmatmul.mubr.f32.vlgmr.msra.gmra.mrb[0].mxu1 %v2240_v14  ;;  %1502 = vmatmul.mubr.f32.vlgmr.msra.gmra.mrb[0].mxu0 %v2240_v14 }
  0xb4   : > { %1540 = vmatpush3.bf16.xpose.msra.mxu1 %v1537_v59  ;;  %1564 = vmatpush3.bf16.xpose.msra.mxu0 %v2242_v15 }
  0xb5   : > { %1542 = vmatprep.subr.bf16.mxu1 %v1541_v63  ;;  %1566 = vmatprep.subr.bf16.mxu0 %v2244_v16 }
  0xb6   : > { %1462 = vmatprep.mubr.f32.mxu1 %v2262_v22  ;;  %1504 = vmatprep.mubr.f32.mxu0 %v2262_v22 }
  0xb7   : > { %1463 = vmatmul.mubr.f32.gmra.mrb[2].mxu1 %v2273_v26  ;;  %1505 = vmatmul.mubr.f32.gmra.mrb[2].mxu0 %v2273_v26 }
  0xb8   : > { %1473 = vmatprep.mubr.f32.mxu1 %v2253_v19  ;;  %1515 = vmatprep.mubr.f32.mxu0 %v2237_v13 }
  0xb9   : > { %927 = vadd.xlane.f32.xlu0 %v2218_v0 }
  0xbc   : > { %1544 = vmatpush3.bf16.xpose.msra.mxu1 %v1541_v63  ;;  %1568 = vmatpush3.bf16.xpose.msra.mxu0 %v2244_v16  ;;  %v965_v16 = vadd.s32 4294967288, %v2348_v12 }
  0xbd   : > { %931 = vadd.xlane.f32.xlu0 %v2222_v2 }
  0xc3   : > { %1474 = vmatmul.mubr.f32.vlgmr.msra.gmra.mrb[0].mxu1 %v2270_v25  ;;  %1516 = vmatmul.mubr.f32.vlgmr.msra.gmra.mrb[0].mxu0 %v2240_v14  ;;  %v2350_v14 = vshrl.u32 %v959_v9, 7 }
  0xc4   : > { %1476 = vmatprep.mubr.f32.mxu1 %v2287_v33  ;;  %1518 = vmatprep.mubr.f32.mxu0 %v2262_v22  ;;  %v979_v22 = vadd.s32 4294967272, %v2348_v12 }
  0xc5   : > { %v963_v18 = vsub.s32 %v2348_v12, %v2350_v14  ;;  %v968_v19 = vsub.s32 %v965_v16, %v2350_v14  ;;  %v975_v23 = vsub.s32 %v972_v17, %v2350_v14  ;;  %vm1070_vm4 = vcmp.eq.s32.totalorder (!%p1381_p7), %v2350_v14, %v2348_v12 }
  0xc6   : > { %v982_v28 = vsub.s32 %v979_v22, %v2350_v14 }
  0xc7   : > { %1477 = vmatmul.mubr.f32.gmra.mrb[2].mxu1 %v2292_v37  ;;  %1519 = vmatmul.mubr.f32.gmra.mrb[2].mxu0 %v2273_v26 }
 0x11c   : > { %v948_v5 = vpop.xlane.xlu1 %947 }
 0x11d   : > { %v1018_v24 = vrot.slane %v948_v5, %v963_v18 }
 0x123   : > { %v950_v7 = vpop.xlane.xlu1 %949 }
 0x124   : > { %v1022_v25 = vrot.slane %v950_v7, %v968_v19 }
 0x126   : > { %v940_v6 = vpop.xlane.xlu0 %939  ;;  %v1023_v32 = vsel %vm970_vm1, %v1022_v25, %v1018_v24 }
 0x127   : > { %v952_v10 = vpop.xlane.xlu1 %951  ;;  %v964_v26 = vrot.slane %v940_v6, %v963_v18 }
 0x128   : > { %v1027_v30 = vrot.slane %v952_v10, %v975_v23 }
 0x12a   : > { %v1028_v36 = vsel %vm977_vm2, %v1027_v30, %v1023_v32 }
 0x12b   : > { %v942_v8 = vpop.xlane.xlu0 %941  ;;  %v954_v13 = vpop.xlane.xlu1 %953 }
 0x12c   : > { %v969_v27 = vrot.slane %v942_v8, %v968_v19  ;;  %v1032_v35 = vrot.slane %v954_v13, %v982_v28 }
 0x12e   : > { %v971_v34 = vsel %vm970_vm1, %v969_v27, %v964_v26  ;;  %v1033_v41 = vsel %vm984_vm3, %v1032_v35, %v1028_v36 }
 0x12f   : > { %v944_v11 = vpop.xlane.xlu0 %943  ;;  %v922_v20 = vpop.xlane.xlu1 %921 }
 0x130   : > { %v976_v33 = vrot.slane %v944_v11, %v975_v23 }
 0x132   : > { %v978_v39 = vsel %vm977_vm2, %v976_v33, %v971_v34  ;;  %v1067_v34 = vadd.s32 (!%p1381_p7), 8, %v2350_v14 }
 0x134   : > { %vm1071_vm8 = vcmp.eq.s32.totalorder (!%p1381_p7), %v1067_v34, %v2348_v12 }
 0x136   : > { %v946_v15 = vpop.xlane.xlu0 %945  ;;  %v926_v29 = vpop.xlane.xlu1 %925 }
 0x137   : > { %v983_v37 = vrot.slane %v946_v15, %v982_v28 }
 0x139   : > { %v985_v42 = vsel %vm984_vm3, %v983_v37, %v978_v39 }
 0x13a   : > { %v1000_v52 = vadd.f32 %v985_v42, %v922_v20  ;;  %v1002_v9 = vadd.f32 %v985_v42, %v926_v29  ;;  %v1068_v29 = vadd.s32 (!%p1381_p7), 16, %v2350_v14 }
 0x13b   : > { %v920_v21 = vpop.xlane.xlu0 %919  ;;  %v930_v38 = vpop.xlane.xlu1 %929 }
 0x13c   : > { %v1042_v45 = vsub.f32 %v930_v38, %v1033_v41  ;;  %v999_v55 = vadd.f32 %v985_v42, %v920_v21  ;;  %vm1072_vm6 = vcmp.eq.s32.totalorder (!%p1381_p7), %v1068_v29, %v2348_v12 }
 0x13e   : > { %v1046_v59 = vmul.f32 2e-06, %v1042_v45 }
 0x13f   : > { %v924_v31 = vpop.xlane.xlu0 %923  ;;  %v934_v50 = vpop.xlane.xlu1 %933 }
 0x140   : > { %v1044_v60 = vsub.f32 %v934_v50, %v1033_v41  ;;  %v1001_v13 = vadd.f32 %v985_v42, %v924_v31  ;;  %v1069_v31 = vadd.s32 (!%p1381_p7), 24, %v2350_v14  ;;  %v1078_v14 = vld [vmem:[#allocation2] sm:$0xff] (!%p1381_p7) }
 0x142   : > { %v1048_v17 = vmul.f32 2e-06, %v1044_v60  ;;  %vm1073_vm7 = vcmp.eq.s32.totalorder (!%p1381_p7), %v1069_v31, %v2348_v12  ;;  %v1081_v12 = vld [vmem:[#allocation2 + $0x18] sm:$0xff] (!%p1381_p7) }
 0x146   : > { %v928_v40 = vpop.xlane.xlu0 %927 }
 0x147   : > { %v1041_v49 = vsub.f32 %v928_v40, %v1033_v41 }
 0x149   : > { %v1045_v5 = vmul.f32 2e-06, %v1041_v49 }
 0x14a   : > { %v932_v53 = vpop.xlane.xlu0 %931 }
 0x14b   : > { %v1043_v6 = vsub.f32 %v932_v53, %v1033_v41 }
 0x14d   : > { %v1047_v20 = vmul.f32 2e-06, %v1043_v6 }
 0x196   : > { %v1475_v43 = vpop.f32.mrb[0].mxu1  ;;  %v1517_v44 = vpop.f32.mrb[0].mxu0 }
 0x197   : > { %v1569_v46 = vadd.f32 %v1517_v44, %v1475_v43  ;;  %v595_v47 = vpop.f32.mrb[1].mxu1  ;;  %v893_v48 = vpop.f32.mrb[1].mxu0  ;;  %v1080_v43 = vld [vmem:[#allocation2 + $0x10] sm:$0xff] (!%p1381_p7) }
 0x198   : > { %v1570_v51 = vadd.f32 %v893_v48, %v595_v47 }
 0x199   : > { %v1004_v54 = vmul.f32 2.0, %v1569_v46  ;;  %v1079_v46 = vld [vmem:[#allocation2 + $0x8] sm:$0xff] (!%p1381_p7) }
 0x19a   : > { %v1003_v56 = vmul.f32 2.0, %v1570_v51  ;;  %v1478_v57 = vpop.f32.mrb[2].mxu1  ;;  %v1520_v58 = vpop.f32.mrb[2].mxu0 }
 0x19b   : > { %v1008_v61 = vsub.f32 %v1000_v52, %v1004_v54  ;;  %v1571_v62 = vadd.f32 %v1520_v58, %v1478_v57  ;;  %v609_v63 = vpop.f32.mrb[3].mxu1  ;;  %v905_v4 = vpop.f32.mrb[3].mxu0 }
 0x19c   : > { %v1007_v7 = vsub.f32 %v999_v55, %v1003_v56  ;;  %v1572_v8 = vadd.f32 %v905_v4, %v609_v63 }
 0x19d   : > { %v1050_v10 = vadd.f32 %v1046_v59, %v1008_v61  ;;  %v1006_v11 = vmul.f32 2.0, %v1571_v62 }
 0x19e   : > { %v1049_v15 = vadd.f32 %v1045_v5, %v1007_v7  ;;  %v1005_v16 = vmul.f32 2.0, %v1572_v8 }
 0x19f   : > { %v1054_v18 = vadd.f32 1.28e-10, %v1050_v10  ;;  %v1010_v19 = vsub.f32 %v1002_v9, %v1006_v11 }
 0x1a0   : > { %v1053_v21 = vadd.f32 1.28e-10, %v1049_v15  ;;  %v1009_v22 = vsub.f32 %v1001_v13, %v1005_v16  ;;  %1064 = sbr.rel (%p1381_p7) target bundleno = 575 (0x23f), region = 52 }
 0x1a1   : > { %v1058_v23 = vmax.f32 %v1054_v18, 0.0  ;;  %v1052_v24 = vadd.f32 %v1048_v17, %v1010_v19 }
 0x1a2   : > { %v1057_v25 = vmax.f32 %v1053_v21, 0.0  ;;  %v1051_v26 = vadd.f32 %v1047_v20, %v1009_v22 }
 0x1a3   : > { %v1056_v27 = vadd.f32 1.28e-10, %v1052_v24  ;;  %v1075_v39 = vsel (!%p1381_p7), %vm1071_vm8, inf, %v1058_v23 }
 0x1a4   : > { %v1055_v28 = vadd.f32 1.28e-10, %v1051_v26  ;;  %v1074_v33 = vsel (!%p1381_p7), %vm1070_vm4, inf, %v1057_v25  ;;  %v1086_v40 = vsel (!%p1381_p7), %vm1082_vm5, %v1075_v39, inf }
 0x1a5   : > { %v1060_v30 = vmax.f32 %v1056_v27, 0.0  ;;  %v1083_v35 = vsel (!%p1381_p7), %vm1082_vm5, %v1074_v33, inf }
 0x1a6   : > { %v1059_v32 = vmax.f32 %v1055_v28, 0.0  ;;  %1084 = vmin.xlane.f32.xlu0 (!%p1381_p7), %v1083_v35 }
 0x1a7   : > { %v1077_v37 = vsel %vm1073_vm7, inf, %v1060_v30 }
 0x1a8   : > { %v1076_v36 = vsel %vm1072_vm6, inf, %v1059_v32  ;;  %v1092_v41 = vsel %vm1082_vm5, %v1077_v37, inf }
 0x1a9   : > { %v1089_v38 = vsel %vm1082_vm5, %v1076_v36, inf }
 0x1aa   : > { %1090 = vmin.xlane.f32.xlu1 %v1089_v38  ;;  %1087 = vmin.xlane.f32.xlu0 %v1086_v40 }
 0x1ae   : > { %1093 = vmin.xlane.f32.xlu1 %v1092_v41 }
 0x233   : > { %v1085_v42 = vpop.xlane.xlu0 %1084 }
 0x234   : > { %v1095_v44 = vmin.f32 %v1078_v14, %v1085_v42 }
 0x236   : > { %1100 = vst.msk [vmem:[#allocation2] sm:$0xff] %vm1099_vm9, %v1095_v44 }
 0x237   : > { %v1091_v45 = vpop.xlane.xlu1 %1090  ;;  %v1088_v48 = vpop.xlane.xlu0 %1087 }
 0x238   : > { %v1097_v47 = vmin.f32 %v1080_v43, %v1091_v45  ;;  %v1096_v49 = vmin.f32 %v1079_v46, %v1088_v48 }
 0x23a   : > { %1102 = vst.msk [vmem:[#allocation2 + $0x10] sm:$0xff] %vm1099_vm9, %v1097_v47  ;;  %1101 = vst.msk [vmem:[#allocation2 + $0x8] sm:$0xff] %vm1099_vm9, %v1096_v49 }
 0x23b   : > { %v1094_v50 = vpop.xlane.xlu1 %1093 }
 0x23c   : > { %v1098_v51 = vmin.f32 %v1081_v12, %v1094_v50 }
 0x23e   : > { %1103 = vst.msk [vmem:[#allocation2 + $0x18] sm:$0xff] %vm1099_vm9, %v1098_v51 }
 0x23f PF: > { %p1382_p5 = scmp.eq.s32.totalorder %s1889_s19, %s1885_s18 }
 0x240   : > { %vm1112_vm10 = vcmask (!%p1382_p5), 261120   ;;  %v1108_v57 = vld [vmem:[#allocation2] sm:$0xff] (!%p1382_p5)  ;;  %vm1129_vm11 = vcmask (!%p1382_p5), 7168  }
 0x241   : > { %1107 = sbr.rel (%p1382_p5) target bundleno = 727 (0x2d7), region = 56  ;;  %v1119_v52 = vsel (!%p1382_p5), %vm1112_vm10, %v1059_v32, inf  ;;  %v1113_v53 = vsel (!%p1382_p5), %vm1112_vm10, %v1057_v25, inf  ;;  %v1122_v54 = vsel (!%p1382_p5), %vm1112_vm10, %v1060_v30, inf  ;;  %v1116_v55 = vsel (!%p1382_p5), %vm1112_vm10, %v1058_v23, inf  ;;  %v1110_v56 = vld [vmem:[#allocation2 + $0x10] sm:$0xff] (!%p1382_p5) }
 0x242   : > { %1120 = vmin.xlane.f32.xlu1 (!%p1382_p5), %v1119_v52  ;;  %1114 = vmin.xlane.f32.xlu0 (!%p1382_p5), %v1113_v53  ;;  %v1109_v63 = vld [vmem:[#allocation2 + $0x8] sm:$0xff] (!%p1382_p5) }
 0x245   : > { %v1111_v62 = vld [vmem:[#allocation2 + $0x18] sm:$0xff] (!%p1382_p5) }
 0x246   : > { %1123 = vmin.xlane.f32.xlu1 (!%p1382_p5), %v1122_v54  ;;  %1117 = vmin.xlane.f32.xlu0 (!%p1382_p5), %v1116_v55 }
 0x2cf   : > { %v1121_v58 = vpop.xlane.xlu1 %1120  ;;  %v1115_v59 = vpop.xlane.xlu0 %1114 }
 0x2d0   : > { %v1127_v60 = vmin.f32 %v1110_v56, %v1121_v58  ;;  %v1125_v61 = vmin.f32 %v1108_v57, %v1115_v59 }
 0x2d2   : > { %1132 = vst.msk [vmem:[#allocation2 + $0x10] sm:$0xff] %vm1129_vm11, %v1127_v60  ;;  %1130 = vst.msk [vmem:[#allocation2] sm:$0xff] %vm1129_vm11, %v1125_v61 }
 0x2d3   : > { %v1124_v4 = vpop.xlane.xlu1 %1123  ;;  %v1118_v5 = vpop.xlane.xlu0 %1117 }
 0x2d4   : > { %v1128_v6 = vmin.f32 %v1111_v62, %v1124_v4  ;;  %v1126_v7 = vmin.f32 %v1109_v63, %v1118_v5 }
 0x2d6   : > { %1133 = vst.msk [vmem:[#allocation2 + $0x18] sm:$0xff] %vm1129_vm11, %v1128_v6  ;;  %1131 = vst.msk [vmem:[#allocation2 + $0x8] sm:$0xff] %vm1129_vm11, %v1126_v7 }
 0x2d7 PF: > { %p1383_p1 = scmp.ne.s32.totalorder %s1885_s18, 1 }
 0x2d8   : > { %v1140_v8 = vld [vmem:[%s2201_s1 + $0x10] sm:$0xff] (!%p1383_p1)  ;;  %v1138_v9 = vld [vmem:[%s2201_s1] sm:$0xff] (!%p1383_p1)  ;;  %v1141_v10 = vld [vmem:[%s2201_s1 + $0x18] sm:$0xff] (!%p1383_p1) }
 0x2d9   : > { %1137 = sbr.rel (%p1383_p1) target bundleno = 904 (0x388), region = 60  ;;  %v1144_v11 = vsub.f32 (!%p1383_p1), %v2222_v2, %v1140_v8  ;;  %v1142_v13 = vsub.f32 (!%p1383_p1), %v2218_v0, %v1138_v9  ;;  %v1145_v15 = vsub.f32 (!%p1383_p1), %v2224_v3, %v1141_v10  ;;  %v1139_v16 = vld [vmem:[%s2201_s1 + $0x8] sm:$0xff] (!%p1383_p1)  ;;  %v1192_v2 = vld [vmem:[#allocation2 + $0x10] sm:$0xff] (!%p1383_p1)  ;;  %v1190_v26 = vld [vmem:[#allocation2] sm:$0xff] (!%p1383_p1) }
 0x2da   : > { %v1143_v17 = vsub.f32 (!%p1383_p1), %v2220_v1, %v1139_v16  ;;  %1697 = vrsqrt.f32 (!%p1383_p1), %v1192_v2  ;;  %vm1210_vm12 = vcmp.eq.f32.partialorder (!%p1383_p1), %v1192_v2, inf  ;;  %vm1196_vm13 = vcmp.eq.f32.partialorder (!%p1383_p1), %v1190_v26, inf }
 0x2db   : > { %v1148_v18 = vadd.f32 (!%p1383_p1), 1e-06, %v1144_v11  ;;  %v1146_v19 = vadd.f32 (!%p1383_p1), 1e-06, %v1142_v13  ;;  %v1149_v20 = vadd.f32 (!%p1383_p1), 1e-06, %v1145_v15  ;;  %1699 = vrsqrt.f32 (!%p1383_p1), %v1190_v26 }
 0x2dc   : > { %v1147_v21 = vadd.f32 (!%p1383_p1), 1e-06, %v1143_v17  ;;  %vm1212_vm14 = vcmp.eq.f32.partialorder (!%p1383_p1), %v1192_v2, 0.0  ;;  %v1213_v36 = vand.u32 (!%p1383_p1), 2147483648, %v1192_v2  ;;  %v1199_v37 = vand.u32 (!%p1383_p1), 2147483648, %v1190_v26 }
 0x2dd   : > { %v1152_v22 = vmul.f32 (!%p1383_p1), %v1148_v18, %v1148_v18  ;;  %v1150_v23 = vmul.f32 (!%p1383_p1), %v1146_v19, %v1146_v19  ;;  %v1153_v24 = vmul.f32 (!%p1383_p1), %v1149_v20, %v1149_v20  ;;  %v1193_v0 = vld [vmem:[#allocation2 + $0x18] sm:$0xff] (!%p1383_p1)  ;;  %v1191_v3 = vld [vmem:[#allocation2 + $0x8] sm:$0xff] (!%p1383_p1)  ;;  %vm1198_vm15 = vcmp.eq.f32.partialorder (!%p1383_p1), %v1190_v26, 0.0 }
 0x2de   : > { %v1151_v25 = vmul.f32 (!%p1383_p1), %v1147_v21, %v1147_v21  ;;  %1701 = vrsqrt.f32 (!%p1383_p1), %v1193_v0  ;;  %vm1217_vm0 = vcmp.eq.f32.partialorder (!%p1383_p1), %v1193_v0, inf  ;;  %vm1203_vm1 = vcmp.eq.f32.partialorder (!%p1383_p1), %v1191_v3, inf }
 0x2df   : > { %1158 = vadd.xlane.f32.xlu1 (!%p1383_p1), %v1152_v22  ;;  %1154 = vadd.xlane.f32.xlu0 (!%p1383_p1), %v1150_v23  ;;  %1703 = vrsqrt.f32 (!%p1383_p1), %v1191_v3  ;;  %v1220_v45 = vand.u32 (!%p1383_p1), 2147483648, %v1193_v0  ;;  %vm1219_vm2 = vcmp.eq.f32.partialorder (!%p1383_p1), %v1193_v0, 0.0  ;;  %vm1205_vm3 = vcmp.eq.f32.partialorder (!%p1383_p1), %v1191_v3, 0.0 }
 0x2e0   : > { %v1206_v12 = vand.u32 2147483648, %v1191_v3 }
 0x2e3   : > { %1160 = vadd.xlane.f32.xlu1 %v1153_v24  ;;  %1156 = vadd.xlane.f32.xlu0 %v1151_v25 }
 0x2e4   : > { %v1698_v1 = vpop.eup %1697 }
 0x2e5   : > { %v1700_v30 = vpop.eup %1699  ;;  %v1209_v29 = vmul.f32 %v1698_v1, %v1192_v2 }
 0x2e6   : > { %v1195_v31 = vmul.f32 %v1700_v30, %v1190_v26 }
 0x2e7   : > { %v1211_v39 = vsel %vm1210_vm12, %v1192_v2, %v1209_v29  ;;  %vm1234_vm12 = vcmask 7168  }
 0x2e8   : > { %v1702_v32 = vpop.eup %1701  ;;  %v1197_v40 = vsel %vm1196_vm13, %v1190_v26, %v1195_v31  ;;  %v1214_v42 = vsel %vm1212_vm14, %v1213_v36, %v1211_v39 }
 0x2e9   : > { %v1704_v35 = vpop.eup %1703  ;;  %v1216_v38 = vmul.f32 %v1702_v32, %v1193_v0  ;;  %v1200_v43 = vsel %vm1198_vm15, %v1199_v37, %v1197_v40 }
 0x2ea   : > { %v1202_v41 = vmul.f32 %v1704_v35, %v1191_v3 }
 0x2eb   : > { %v1218_v44 = vsel %vm1217_vm0, %v1193_v0, %v1216_v38 }
 0x2ec   : > { %v1204_v50 = vsel %vm1203_vm1, %v1191_v3, %v1202_v41  ;;  %v1221_v56 = vsel %vm1219_vm2, %v1220_v45, %v1218_v44 }
 0x2ed   : > { %v1207_v60 = vsel %vm1205_vm3, %v1206_v12, %v1204_v50 }
 0x36c   : > { %v1159_v27 = vpop.xlane.xlu1 %1158  ;;  %v1155_v28 = vpop.xlane.xlu0 %1154 }
 0x36d   : > { %1705 = vrsqrt.f32 %v1159_v27  ;;  %vm1178_vm4 = vcmp.eq.f32.partialorder %v1159_v27, inf  ;;  %v1181_v48 = vand.u32 2147483648, %v1159_v27  ;;  %vm1180_vm5 = vcmp.eq.f32.partialorder %v1159_v27, 0.0 }
 0x36e   : > { %1707 = vrsqrt.f32 %v1155_v28  ;;  %vm1164_vm6 = vcmp.eq.f32.partialorder %v1155_v28, inf  ;;  %v1167_v52 = vand.u32 2147483648, %v1155_v28  ;;  %vm1166_vm7 = vcmp.eq.f32.partialorder %v1155_v28, 0.0 }
 0x370   : > { %v1161_v33 = vpop.xlane.xlu1 %1160  ;;  %v1157_v34 = vpop.xlane.xlu0 %1156 }
 0x371   : > { %1709 = vrsqrt.f32 %v1161_v33  ;;  %vm1185_vm8 = vcmp.eq.f32.partialorder %v1161_v33, inf  ;;  %vm1187_vm9 = vcmp.eq.f32.partialorder %v1161_v33, 0.0  ;;  %v1188_v62 = vand.u32 2147483648, %v1161_v33 }
 0x372   : > { %1711 = vrsqrt.f32 %v1157_v34  ;;  %vm1171_vm10 = vcmp.eq.f32.partialorder %v1157_v34, inf  ;;  %v1174_v6 = vand.u32 2147483648, %v1157_v34  ;;  %vm1173_vm11 = vcmp.eq.f32.partialorder %v1157_v34, 0.0 }
 0x377   : > { %v1706_v14 = vpop.eup %1705 }
 0x378   : > { %v1708_v46 = vpop.eup %1707  ;;  %v1177_v47 = vmul.f32 %v1706_v14, %v1159_v27 }
 0x379   : > { %v1163_v49 = vmul.f32 %v1708_v46, %v1155_v28 }
 0x37a   : > { %v1179_v51 = vsel %vm1178_vm4, %v1159_v27, %v1177_v47 }
 0x37b   : > { %v1710_v53 = vpop.eup %1709  ;;  %v1182_v54 = vsel %vm1180_vm5, %v1181_v48, %v1179_v51  ;;  %v1165_v55 = vsel %vm1164_vm6, %v1155_v28, %v1163_v49 }
 0x37c   : > { %v1712_v57 = vpop.eup %1711  ;;  %v1168_v58 = vsel %vm1166_vm7, %v1167_v52, %v1165_v55  ;;  %v1184_v59 = vmul.f32 %v1710_v53, %v1161_v33  ;;  %v1224_v4 = vsub.f32 %v1182_v54, %v1214_v42 }
 0x37d   : > { %v1222_v61 = vsub.f32 %v1168_v58, %v1200_v43  ;;  %v1170_v63 = vmul.f32 %v1712_v57, %v1157_v34 }
 0x37e   : > { %v1186_v5 = vsel %vm1185_vm8, %v1161_v33, %v1184_v59  ;;  %v1228_v16 = vadd.f32 0.2, %v1224_v4 }
 0x37f   : > { %v1226_v7 = vadd.f32 0.2, %v1222_v61  ;;  %v1189_v8 = vsel %vm1187_vm9, %v1188_v62, %v1186_v5  ;;  %v1172_v9 = vsel %vm1171_vm10, %v1157_v34, %v1170_v63 }
 0x380   : > { %v1225_v10 = vsub.f32 %v1189_v8, %v1221_v56  ;;  %v1175_v11 = vsel %vm1173_vm11, %v1174_v6, %v1172_v9  ;;  %v1232_v20 = vmax.f32 %v1228_v16, 0.0 }
 0x381   : > { %v1230_v13 = vmax.f32 %v1226_v7, 0.0  ;;  %v1223_v15 = vsub.f32 %v1175_v11, %v1207_v60 }
 0x382   : > { %v1229_v17 = vadd.f32 0.2, %v1225_v10  ;;  %1237 = vst.msk [vmem:[%s2216_s27 + $0x10] sm:$0xff] %vm1234_vm12, %v1232_v20 }
 0x383   : > { %1235 = vst.msk [vmem:[%s2216_s27] sm:$0xff] %vm1234_vm12, %v1230_v13  ;;  %v1227_v18 = vadd.f32 0.2, %v1223_v15 }
 0x384   : > { %v1233_v21 = vmax.f32 %v1229_v17, 0.0 }
 0x385   : > { %v1231_v19 = vmax.f32 %v1227_v18, 0.0 }
 0x386   : > { %1238 = vst.msk [vmem:[%s2216_s27 + $0x18] sm:$0xff] %vm1234_vm12, %v1233_v21 }
 0x387   : > { %1236 = vst.msk [vmem:[%s2216_s27 + $0x8] sm:$0xff] %vm1234_vm12, %v1231_v19 }
 0x388 PF: > { %s19_s22 = sadd.s32 1, %s1901_s22   ;;  %s2459_s0 = sld [smem:[#allocation11_spill]] }
 0x389   : > { %p16_p9 = scmp.ge.s32.totalorder %s19_s22, 6   ;;  %s2460_s12 = smov %s1865_s13 }
 0x38a   : > { %s2461_s13 = smov %s1869_s14  ;;  %s2462_s14 = smov %s2138_s8 }
 0x38b   : > { %s2463_s15 = smov %s1877_s16  ;;  %s2464_s16 = smov %s1881_s17 }
 0x38c   : > { %s2465_s17 = smov %s2151_s4  ;;  %s2466_s18 = smov %s1893_s20 }
 0x38d   : > { %s2467_s19 = smov %s1897_s21  ;;  %s2469_s21 = smov %s2475_s6 }
 0x38e   : > { %s2468_s20 = smov %s2459_s0  ;;  %18 = sbr.rel (!%p16_p9) target bundleno = 12 (0xc), region = 112 }
 0x395   :  { %1261 = vsyncpa [#allocation4], 1 }
 0x396   :  { %1263 = vsyncpa [#allocation4 + $0x1], 1 }
 0x397   :  { %1264 = vsyncpa [#allocation6], 1 }
 0x398   :  { %1266 = vsyncpa [#allocation6 + $0x1], 1 }

</bundles_post_ra>
